<compile_context>
chip_gen: v7x
topology: tpu7x:2x2x1
jax: 0.10.0
libtpu: 0.0.40
codegen_flags: <defaults>
</compile_context>

<pallas_src>
import functools

import jax
import jax.numpy as jnp
import numpy as np
from jax import lax
from jax.experimental import pallas as pl
from jax.experimental.pallas import tpu as pltpu

LEAKY_SLOPE = 0.01   # PyTorch nn.LeakyReLU default
BN_EPS = 1e-5        # PyTorch nn.BatchNorm2d default


def _leaky(y):
    return jnp.where(y > 0, y, LEAKY_SLOPE * y)


def _div_mod_const(x_i32, d):
    """Exact elementwise (x // d, x % d) for non-negative int32 x and positive
    python-int d, built only from ops that always lower on the TPU VPU
    (f32 mul, f32<->i32 casts, int mul/add, compare, select).  The f32
    estimate is within +-1 of the true quotient for x < 2**24, so a single
    correction step suffices."""
    q = (x_i32.astype(jnp.float32) * np.float32(1.0 / d)).astype(jnp.int32)
    r = x_i32 - q * d
    q = jnp.where(r < 0, q - 1, q)
    r = jnp.where(r < 0, r + d, r)
    q = jnp.where(r >= d, q + 1, q)
    r = jnp.where(r >= d, r - d, r)
    return q, r


# ---------------------------------------------------------------------------
# Fused kernel: conv1(1x1)+BN+act  ->  conv2(3x3,pad=1)+BN+act  (+ residual)
# Layout: channel-major, spatial-flattened.  Per grid step:
#   x_ref  : (Cin , PB)        PB = lanes per step (multiple of 128)
#   w1_ref : (Ch  , Cin)       BN-folded 1x1 weights
#   b1_ref : (Ch  , 1)
#   w2_ref : (9, Cout, Ch)     BN-folded 3x3 weights, one (Cout, Ch) slab/tap
#   b2_ref : (Cout, 1)
#   o_ref  : (Cout, PB)
# ---------------------------------------------------------------------------
def fused_block_kernel(x_ref, w1_ref, b1_ref, w2_ref, b2_ref, o_ref,
                       *, H, W, use_shortcut):
    PB = x_ref.shape[1]
    Cout = w2_ref.shape[1]
    P = H * W

    # ---- conv1 (1x1) + folded BN + LeakyReLU ------------------------------
    y1 = jnp.dot(w1_ref[...], x_ref[...], preferred_element_type=jnp.float32)
    y1 = _leaky(y1 + b1_ref[...])
    # One cast for the whole tap construction (bf16 halves roll/select work;
    # the matmul still accumulates in f32 via preferred_element_type).
    y1 = y1.astype(w2_ref.dtype)                                 # (Ch, PB)

    # ---- in-kernel zero-padding masks: one iota + a few compares ----------
    idx = lax.broadcasted_iota(jnp.int32, (1, PB), 1)
    _, p = _div_mod_const(idx, P)            # position within its image
    row, col = _div_mod_const(p, W)
    up = row > 0                             # neighbour at row-1 is inside
    down = row < H - 1                       # neighbour at row+1 is inside
    left = col > 0
    right = col < W - 1
    tap_mask = {
        (0, 0): up & left,   (0, 1): up,   (0, 2): up & right,
        (1, 0): left,        (1, 1): None, (1, 2): right,
        (2, 0): down & left, (2, 1): down, (2, 2): down & right,
    }

    # ---- conv2 (3x3, pad=1): 9 accumulating K=Ch matmuls -------------------
    acc = jnp.zeros((Cout, PB), jnp.float32)
    t = 0
    for ky in range(3):
        for kx in range(3):
            off = (ky - 1) * W + (kx - 1)
            if off == 0:
                tap = y1                                         # centre: no roll/mask
            else:
                # shifted[:, i] == y1[:, (i + off) % PB]; positions whose tap
                # falls outside the image (incl. cross-image / pad wrap) are
                # zeroed by the mask.
                shifted = pltpu.roll(y1, shift=(-off) % PB, axis=1)
                tap = jnp.where(tap_mask[(ky, kx)], shifted,
                                jnp.zeros_like(shifted))
            acc = acc + jnp.dot(w2_ref[t], tap,
                                preferred_element_type=jnp.float32)
            t += 1

    y2 = _leaky(acc + b2_ref[...])                               # (Cout, PB) f32
    if use_shortcut:                                             # static (Cin == Cout)
        y2 = y2 + x_ref[...].astype(jnp.float32)
    o_ref[...] = y2.astype(o_ref.dtype)


# ---------------------------------------------------------------------------
# Block sizing
# ---------------------------------------------------------------------------
def _pick_images_per_block(N, P, Cin, Ch, Cout, in_bytes, out_bytes):
    """Images per grid step: lane axis 128-aligned, >= ~2048 lanes if possible,
    under a rough VMEM budget, ib | N.  Returns None if no aligned split exists
    (caller falls back to a single zero-padded block)."""
    divisors = [d for d in range(1, N + 1) if N % d == 0]
    legal = [d for d in divisors if (d * P) % 128 == 0]
    if not legal:
        return None
    # Rough per-lane-column VMEM bytes: double-buffered x & out + f32 y1/acc
    # + one tap temp.
    per_lane = (2 * Cin * in_bytes + 2 * Cout * out_bytes
                + (Ch + Cout) * 4 + 2 * Ch * in_bytes)
    budget = 24 << 20          # headroom under the 32 MiB scoped VMEM default
    fit = [d for d in legal if d * P * per_lane <= budget] or [min(legal)]
    big = [d for d in fit if d * P >= 2048]
    # Smallest divisor reaching ~2048 lanes keeps the grid as long as possible
    # (>= 2 "parallel" steps feeds both v7x TensorCores at large shapes).
    return min(big) if big else max(fit)


# ---------------------------------------------------------------------------
# Channel-major entry point (use this to chain Blocks without layout passes)
# ---------------------------------------------------------------------------
def block_forward_channel_major(x_cm, params, *, img_hw, shortcut=True,
                                compute_dtype=jnp.float32,
                                out_dtype=jnp.float32):
    """x_cm: (Cin, N*H*W) channel-major activations -> (Cout, N*H*W)."""
    w1, b1, scale1, shift1, w2, b2, scale2, shift2 = params
    H, W = img_hw
    Cin, total = x_cm.shape
    P = H * W
    N = total // P
    Ch = w1.shape[1]
    Cout = w2.shape[3]
    use_shortcut = bool(shortcut) and (Cin == Cout)

    x_cm = x_cm.astype(compute_dtype)

    # ---- Fold BN (inference) + conv bias into weights ----------------------
    w1f = (scale1[:, None] * w1.T).astype(compute_dtype)               # (Ch, Cin)
    b1f = (b1 * scale1 + shift1).reshape(Ch, 1).astype(jnp.float32)
    # (3,3,Ch,Cout) -> (9, Cout, Ch), tap t = ky*3+kx, BN scale folded in.
    w2tap = jnp.transpose(w2.reshape(9, Ch, Cout), (0, 2, 1))
    w2f = (scale2[None, :, None] * w2tap).astype(compute_dtype)        # (9, Cout, Ch)
    b2f = (b2 * scale2 + shift2).reshape(Cout, 1).astype(jnp.float32)

    # ---- Lane-axis tiling ---------------------------------------------------
    in_bytes = jnp.dtype(compute_dtype).itemsize
    out_bytes = jnp.dtype(out_dtype).itemsize
    ib = _pick_images_per_block(N, P, Cin, Ch, Cout, in_bytes, out_bytes)
    if ib is not None:
        PB = ib * P
        grid = (N // ib,)
        total_padded = total
        x_in = x_cm
    else:
        # No image-aligned 128-multiple split: zero-pad the flattened spatial
        # axis and run one block.  Pad lanes only feed masked (wrap) taps and
        # are sliced off below.
        total_padded = ((total + 127) // 128) * 128
        PB = total_padded
        grid = (1,)
        x_in = jnp.pad(x_cm, ((0, 0), (0, total_padded - total)))

    kernel = functools.partial(fused_block_kernel, H=H, W=W,
                               use_shortcut=use_shortcut)

    y_cm = pl.pallas_call(
        kernel,
        out_shape=jax.ShapeDtypeStruct((Cout, total_padded), out_dtype),
        grid=grid,
        in_specs=[
            pl.BlockSpec((Cin, PB), lambda n: (0, n)),
            pl.BlockSpec((Ch, Cin), lambda n: (0, 0)),
            pl.BlockSpec((Ch, 1), lambda n: (0, 0)),
            pl.BlockSpec((9, Cout, Ch), lambda n: (0, 0, 0)),
            pl.BlockSpec((Cout, 1), lambda n: (0, 0)),
        ],
        out_specs=pl.BlockSpec((Cout, PB), lambda n: (0, n)),
        compiler_params=pltpu.CompilerParams(
            dimension_semantics=("parallel",)),
    )(x_in, w1f, b1f, w2f, b2f)

    if total_padded != total:
        y_cm = y_cm[:, :total]
    return y_cm


# ---------------------------------------------------------------------------
# NCHW convenience wrapper
# ---------------------------------------------------------------------------
def block_forward(x_nchw, params, *, shortcut=True, compute_dtype=jnp.float32,
                  out_dtype=None):
    """(N, Cin, H, W) -> (N, Cout, H, W).  For chained Blocks prefer
    block_forward_channel_major to avoid the two layout passes."""
    N, Cin, H, W = x_nchw.shape
    Cout = params[4].shape[3]
    if out_dtype is None:
        out_dtype = x_nchw.dtype
    x_cm = jnp.transpose(x_nchw, (1, 0, 2, 3)).reshape(Cin, N * H * W)
    y_cm = block_forward_channel_major(
        x_cm, params, img_hw=(H, W), shortcut=shortcut,
        compute_dtype=compute_dtype, out_dtype=out_dtype)
    return jnp.transpose(y_cm.reshape(Cout, N, H, W), (1, 0, 2, 3))


# ---------------------------------------------------------------------------
# Pure-JAX reference (for correctness check)
# ---------------------------------------------------------------------------
def block_reference(x_nchw, params, *, shortcut=True):
    w1, b1, scale1, shift1, w2, b2, scale2, shift2 = params
    N, Cin, H, W = x_nchw.shape
    Cout = w2.shape[3]
    use_shortcut = bool(shortcut) and (Cin == Cout)
    x = jnp.transpose(x_nchw, (0, 2, 3, 1))
    dn = ("NHWC", "HWIO", "NHWC")
    y = lax.conv_general_dilated(x, w1.reshape(1, 1, *w1.shape), (1, 1),
                                 "VALID", dimension_numbers=dn) + b1
    y = _leaky(y * scale1 + shift1)
    y = lax.conv_general_dilated(y, w2, (1, 1), "SAME",
                                 dimension_numbers=dn) + b2
    y = _leaky(y * scale2 + shift2)
    if use_shortcut:
        y = y + x
    return jnp.transpose(y, (0, 3, 1, 2))


# ---------------------------------------------------------------------------
if __name__ == "__main__":
    key = jax.random.PRNGKey(0)
    ks = jax.random.split(key, 16)

    # Block(in_chans=8, out_chans=8, expand_ratio=0.5, shortcut=True)
    N, Cin, H, W = 2, 8, 16, 16
    Cout = 8
    hidden = int(Cout * 0.5)  # 4

    x = jax.random.normal(ks[0], (N, Cin, H, W), jnp.float32)

    # conv1 parameters (1x1 conv stored as (Cin, hidden))
    w1 = 0.2 * jax.random.normal(ks[1], (Cin, hidden), jnp.float32)
    b1 = 0.1 * jax.random.normal(ks[2], (hidden,), jnp.float32)
    g1 = 1.0 + 0.1 * jax.random.normal(ks[3], (hidden,), jnp.float32)
    beta1 = 0.1 * jax.random.normal(ks[4], (hidden,), jnp.float32)
    mean1 = 0.1 * jax.random.normal(ks[5], (hidden,), jnp.float32)
    var1 = 1.0 + 0.1 * jnp.abs(jax.random.normal(ks[6], (hidden,), jnp.float32))

    # conv2 parameters (3x3 conv stored HWIO: (3, 3, hidden, Cout))
    w2 = 0.2 * jax.random.normal(ks[7], (3, 3, hidden, Cout), jnp.float32)
    b2 = 0.1 * jax.random.normal(ks[8], (Cout,), jnp.float32)
    g2 = 1.0 + 0.1 * jax.random.normal(ks[9], (Cout,), jnp.float32)
    beta2 = 0.1 * jax.random.normal(ks[10], (Cout,), jnp.float32)
    mean2 = 0.1 * jax.random.normal(ks[11], (Cout,), jnp.float32)
    var2 = 1.0 + 0.1 * jnp.abs(jax.random.normal(ks[12], (Cout,), jnp.float32))

    # Fold BatchNorm (inference) into per-channel scale/shift.
    scale1 = g1 / jnp.sqrt(var1 + BN_EPS)
    shift1 = beta1 - mean1 * scale1
    scale2 = g2 / jnp.sqrt(var2 + BN_EPS)
    shift2 = beta2 - mean2 * scale2

    params = (w1, b1, scale1, shift1, w2, b2, scale2, shift2)

    # --- fp32, shortcut=True (single 512-lane block, grid=(1,)) --------------
    out = jax.block_until_ready(block_forward(x, params, shortcut=True))
    ref = jax.block_until_ready(block_reference(x, params, shortcut=True))
    assert out.shape == (N, Cout, H, W), out.shape
    np.testing.assert_allclose(np.asarray(out), np.asarray(ref),
                               rtol=1e-3, atol=1e-3)

    # --- fp32, shortcut=False ------------------------------------------------
    out_ns = jax.block_until_ready(block_forward(x, params, shortcut=False))
    ref_ns = jax.block_until_ready(block_reference(x, params, shortcut=False))
    np.testing.assert_allclose(np.asarray(out_ns), np.asarray(ref_ns),
                               rtol=1e-3, atol=1e-3)

    # --- fp32, N=3 images of 8x8 (H*W not a multiple of 128): exercises the
    #     padded single-block path, multiple images per block, and rolls that
    #     cross image boundaries (always masked). ------------------------------
    x_small = jax.random.normal(ks[13], (3, Cin, 8, 8), jnp.float32)
    out_s = jax.block_until_ready(block_forward(x_small, params, shortcut=True))
    ref_s = jax.block_until_ready(block_reference(x_small, params, shortcut=True))
    np.testing.assert_allclose(np.asarray(out_s), np.asarray(ref_s),
                               rtol=1e-3, atol=1e-3)

    # --- bf16 MXU inputs + bf16 output (chained-Block mode), looser tolerance
    out_bf16 = jax.block_until_ready(
        block_forward(x, params, shortcut=True,
                      compute_dtype=jnp.bfloat16, out_dtype=jnp.bfloat16))
    np.testing.assert_allclose(np.asarray(out_bf16.astype(jnp.float32)),
                               np.asarray(ref), rtol=5e-2, atol=5e-2)

    print("KERNEL_OK")
</pallas_src>

<mosaic_0001>
module attributes {stable_mosaic.version = 11 : i64} {
  func.func @fused_block_kernel(%arg0: i32, %arg1: memref<8x512xf32, #tpu.memory_space<vmem>>, %arg2: memref<4x8xf32, #tpu.memory_space<vmem>>, %arg3: memref<4x1xf32, #tpu.memory_space<vmem>>, %arg4: memref<9x8x4xf32, #tpu.memory_space<vmem>>, %arg5: memref<8x1xf32, #tpu.memory_space<vmem>>, %arg6: memref<8x512xf32, #tpu.memory_space<vmem>>) attributes {dimension_semantics = [#tpu.dimension_semantics<parallel>], iteration_bounds = array<i64: 1>, scalar_prefetch = 0 : i64, scratch_operands = 0 : i64, tpu.core_type = #tpu.core_type<tc>, window_params = [{transform_indices = @transform_0, window_bounds = array<i64: 8, 512>}, {pipeline_mode = #tpu.pipeline_mode<synchronous>, transform_indices = @transform_1, window_bounds = array<i64: 4, 8>}, {pipeline_mode = #tpu.pipeline_mode<synchronous>, transform_indices = @transform_2, window_bounds = array<i64: 4, 1>}, {pipeline_mode = #tpu.pipeline_mode<synchronous>, transform_indices = @transform_3, window_bounds = array<i64: 9, 8, 4>}, {pipeline_mode = #tpu.pipeline_mode<synchronous>, transform_indices = @transform_4, window_bounds = array<i64: 8, 1>}, {transform_indices = @transform_5, window_bounds = array<i64: 8, 512>}]} {
    %c0 = arith.constant 0 : index
    %c0_0 = arith.constant 0 : index
    %0 = vector.load %arg2[%c0, %c0_0] : memref<4x8xf32, #tpu.memory_space<vmem>>, vector<4x8xf32>
    %c0_1 = arith.constant 0 : index
    %c0_2 = arith.constant 0 : index
    %1 = vector.load %arg1[%c0_1, %c0_2] : memref<8x512xf32, #tpu.memory_space<vmem>>, vector<8x512xf32>
    %cst = arith.constant dense<0.000000e+00> : vector<4x512xf32>
    %2 = tpu.matmul %0, %1, %cst {dimension_numbers = #tpu.dot_dimension_numbers<[1], [0], [0], [1], [0, 0, 1, 1], [], []>} : vector<4x8xf32>, vector<8x512xf32>, vector<4x512xf32> -> vector<4x512xf32>
    %c0_3 = arith.constant 0 : index
    %c0_4 = arith.constant 0 : index
    %3 = vector.load %arg3[%c0_3, %c0_4] : memref<4x1xf32, #tpu.memory_space<vmem>>, vector<4x1xf32>
    %4 = vector.broadcast %3 : vector<4x1xf32> to vector<4x512xf32>
    %5 = arith.addf %2, %4 : vector<4x512xf32>
    %cst_5 = arith.constant 0.000000e+00 : f32
    %6 = vector.broadcast %cst_5 : f32 to vector<4x512xf32>
    %7 = arith.cmpf ogt, %5, %6 : vector<4x512xf32>
    %cst_6 = arith.constant 0.00999999977 : f32
    %8 = vector.broadcast %cst_6 : f32 to vector<4x512xf32>
    %9 = arith.mulf %8, %5 : vector<4x512xf32>
    %10 = arith.select %7, %5, %9 : vector<4x512xi1>, vector<4x512xf32>
    %11 = tpu.iota {dimensions = array<i32: 1>} : vector<1x512xi32>
    %12 = arith.sitofp %11 : vector<1x512xi32> to vector<1x512xf32>
    %cst_7 = arith.constant 3.906250e-03 : f32
    %13 = vector.broadcast %cst_7 : f32 to vector<1x512xf32>
    %14 = arith.mulf %12, %13 : vector<1x512xf32>
    %15 = arith.fptosi %14 : vector<1x512xf32> to vector<1x512xi32>
    %c256_i32 = arith.constant 256 : i32
    %16 = vector.broadcast %c256_i32 : i32 to vector<1x512xi32>
    %17 = arith.muli %15, %16 : vector<1x512xi32>
    %18 = arith.subi %11, %17 : vector<1x512xi32>
    %c0_i32 = arith.constant 0 : i32
    %19 = vector.broadcast %c0_i32 : i32 to vector<1x512xi32>
    %20 = arith.cmpi slt, %18, %19 : vector<1x512xi32>
    %c256_i32_8 = arith.constant 256 : i32
    %21 = vector.broadcast %c256_i32_8 : i32 to vector<1x512xi32>
    %22 = arith.addi %18, %21 : vector<1x512xi32>
    %23 = arith.select %20, %22, %18 : vector<1x512xi1>, vector<1x512xi32>
    %c256_i32_9 = arith.constant 256 : i32
    %24 = vector.broadcast %c256_i32_9 : i32 to vector<1x512xi32>
    %25 = arith.cmpi sge, %23, %24 : vector<1x512xi32>
    %c256_i32_10 = arith.constant 256 : i32
    %26 = vector.broadcast %c256_i32_10 : i32 to vector<1x512xi32>
    %27 = arith.subi %23, %26 : vector<1x512xi32>
    %28 = arith.select %25, %27, %23 : vector<1x512xi1>, vector<1x512xi32>
    %29 = arith.sitofp %28 : vector<1x512xi32> to vector<1x512xf32>
    %cst_11 = arith.constant 6.250000e-02 : f32
    %30 = vector.broadcast %cst_11 : f32 to vector<1x512xf32>
    %31 = arith.mulf %29, %30 : vector<1x512xf32>
    %32 = arith.fptosi %31 : vector<1x512xf32> to vector<1x512xi32>
    %c16_i32 = arith.constant 16 : i32
    %33 = vector.broadcast %c16_i32 : i32 to vector<1x512xi32>
    %34 = arith.muli %32, %33 : vector<1x512xi32>
    %35 = arith.subi %28, %34 : vector<1x512xi32>
    %c0_i32_12 = arith.constant 0 : i32
    %36 = vector.broadcast %c0_i32_12 : i32 to vector<1x512xi32>
    %37 = arith.cmpi slt, %35, %36 : vector<1x512xi32>
    %c1_i32 = arith.constant 1 : i32
    %38 = vector.broadcast %c1_i32 : i32 to vector<1x512xi32>
    %39 = arith.subi %32, %38 : vector<1x512xi32>
    %40 = arith.select %37, %39, %32 : vector<1x512xi1>, vector<1x512xi32>
    %c0_i32_13 = arith.constant 0 : i32
    %41 = vector.broadcast %c0_i32_13 : i32 to vector<1x512xi32>
    %42 = arith.cmpi slt, %35, %41 : vector<1x512xi32>
    %c16_i32_14 = arith.constant 16 : i32
    %43 = vector.broadcast %c16_i32_14 : i32 to vector<1x512xi32>
    %44 = arith.addi %35, %43 : vector<1x512xi32>
    %45 = arith.select %42, %44, %35 : vector<1x512xi1>, vector<1x512xi32>
    %c16_i32_15 = arith.constant 16 : i32
    %46 = vector.broadcast %c16_i32_15 : i32 to vector<1x512xi32>
    %47 = arith.cmpi sge, %45, %46 : vector<1x512xi32>
    %c1_i32_16 = arith.constant 1 : i32
    %48 = vector.broadcast %c1_i32_16 : i32 to vector<1x512xi32>
    %49 = arith.addi %40, %48 : vector<1x512xi32>
    %50 = arith.select %47, %49, %40 : vector<1x512xi1>, vector<1x512xi32>
    %c16_i32_17 = arith.constant 16 : i32
    %51 = vector.broadcast %c16_i32_17 : i32 to vector<1x512xi32>
    %52 = arith.cmpi sge, %45, %51 : vector<1x512xi32>
    %c16_i32_18 = arith.constant 16 : i32
    %53 = vector.broadcast %c16_i32_18 : i32 to vector<1x512xi32>
    %54 = arith.subi %45, %53 : vector<1x512xi32>
    %55 = arith.select %52, %54, %45 : vector<1x512xi1>, vector<1x512xi32>
    %c0_i32_19 = arith.constant 0 : i32
    %56 = vector.broadcast %c0_i32_19 : i32 to vector<1x512xi32>
    %57 = arith.cmpi sgt, %50, %56 : vector<1x512xi32>
    %c15_i32 = arith.constant 15 : i32
    %58 = vector.broadcast %c15_i32 : i32 to vector<1x512xi32>
    %59 = arith.cmpi slt, %50, %58 : vector<1x512xi32>
    %c0_i32_20 = arith.constant 0 : i32
    %60 = vector.broadcast %c0_i32_20 : i32 to vector<1x512xi32>
    %61 = arith.cmpi sgt, %55, %60 : vector<1x512xi32>
    %c15_i32_21 = arith.constant 15 : i32
    %62 = vector.broadcast %c15_i32_21 : i32 to vector<1x512xi32>
    %63 = arith.cmpi slt, %55, %62 : vector<1x512xi32>
    %64 = arith.andi %57, %61 : vector<1x512xi1>
    %65 = arith.andi %57, %63 : vector<1x512xi1>
    %66 = arith.andi %59, %61 : vector<1x512xi1>
    %67 = arith.andi %59, %63 : vector<1x512xi1>
    %cst_22 = arith.constant 0.000000e+00 : f32
    %68 = vector.broadcast %cst_22 : f32 to vector<8x512xf32>
    %c17_i32 = arith.constant 17 : i32
    %69 = tpu.dynamic_rotate %10 by %c17_i32 dim 1 : vector<4x512xf32>, i32 -> vector<4x512xf32>
    %cst_23 = arith.constant 0.000000e+00 : f32
    %70 = vector.broadcast %cst_23 : f32 to vector<4x512xf32>
    %71 = vector.shape_cast %64 : vector<1x512xi1> to vector<1x512xi1>
    %72 = vector.broadcast %71 : vector<1x512xi1> to vector<4x512xi1>
    %73 = arith.select %72, %69, %70 : vector<4x512xi1>, vector<4x512xf32>
    %c0_24 = arith.constant 0 : index
    %c0_25 = arith.constant 0 : index
    %c0_26 = arith.constant 0 : index
    %74 = vector.load %arg4[%c0_24, %c0_25, %c0_26] : memref<9x8x4xf32, #tpu.memory_space<vmem>>, vector<1x8x4xf32>
    %75 = vector.shape_cast %74 : vector<1x8x4xf32> to vector<8x4xf32>
    %cst_27 = arith.constant dense<0.000000e+00> : vector<8x512xf32>
    %76 = tpu.matmul %75, %73, %cst_27 {dimension_numbers = #tpu.dot_dimension_numbers<[1], [0], [0], [1], [0, 0, 1, 1], [], []>} : vector<8x4xf32>, vector<4x512xf32>, vector<8x512xf32> -> vector<8x512xf32>
    %77 = arith.addf %68, %76 : vector<8x512xf32>
    %c16_i32_28 = arith.constant 16 : i32
    %78 = tpu.dynamic_rotate %10 by %c16_i32_28 dim 1 : vector<4x512xf32>, i32 -> vector<4x512xf32>
    %cst_29 = arith.constant 0.000000e+00 : f32
    %79 = vector.broadcast %cst_29 : f32 to vector<4x512xf32>
    %80 = vector.shape_cast %57 : vector<1x512xi1> to vector<1x512xi1>
    %81 = vector.broadcast %80 : vector<1x512xi1> to vector<4x512xi1>
    %82 = arith.select %81, %78, %79 : vector<4x512xi1>, vector<4x512xf32>
    %c1 = arith.constant 1 : index
    %c0_30 = arith.constant 0 : index
    %c0_31 = arith.constant 0 : index
    %83 = vector.load %arg4[%c1, %c0_30, %c0_31] : memref<9x8x4xf32, #tpu.memory_space<vmem>>, vector<1x8x4xf32>
    %84 = vector.shape_cast %83 : vector<1x8x4xf32> to vector<8x4xf32>
    %cst_32 = arith.constant dense<0.000000e+00> : vector<8x512xf32>
    %85 = tpu.matmul %84, %82, %cst_32 {dimension_numbers = #tpu.dot_dimension_numbers<[1], [0], [0], [1], [0, 0, 1, 1], [], []>} : vector<8x4xf32>, vector<4x512xf32>, vector<8x512xf32> -> vector<8x512xf32>
    %86 = arith.addf %77, %85 : vector<8x512xf32>
    %c15_i32_33 = arith.constant 15 : i32
    %87 = tpu.dynamic_rotate %10 by %c15_i32_33 dim 1 : vector<4x512xf32>, i32 -> vector<4x512xf32>
    %cst_34 = arith.constant 0.000000e+00 : f32
    %88 = vector.broadcast %cst_34 : f32 to vector<4x512xf32>
    %89 = vector.shape_cast %65 : vector<1x512xi1> to vector<1x512xi1>
    %90 = vector.broadcast %89 : vector<1x512xi1> to vector<4x512xi1>
    %91 = arith.select %90, %87, %88 : vector<4x512xi1>, vector<4x512xf32>
    %c2 = arith.constant 2 : index
    %c0_35 = arith.constant 0 : index
    %c0_36 = arith.constant 0 : index
    %92 = vector.load %arg4[%c2, %c0_35, %c0_36] : memref<9x8x4xf32, #tpu.memory_space<vmem>>, vector<1x8x4xf32>
    %93 = vector.shape_cast %92 : vector<1x8x4xf32> to vector<8x4xf32>
    %cst_37 = arith.constant dense<0.000000e+00> : vector<8x512xf32>
    %94 = tpu.matmul %93, %91, %cst_37 {dimension_numbers = #tpu.dot_dimension_numbers<[1], [0], [0], [1], [0, 0, 1, 1], [], []>} : vector<8x4xf32>, vector<4x512xf32>, vector<8x512xf32> -> vector<8x512xf32>
    %95 = arith.addf %86, %94 : vector<8x512xf32>
    %c1_i32_38 = arith.constant 1 : i32
    %96 = tpu.dynamic_rotate %10 by %c1_i32_38 dim 1 : vector<4x512xf32>, i32 -> vector<4x512xf32>
    %cst_39 = arith.constant 0.000000e+00 : f32
    %97 = vector.broadcast %cst_39 : f32 to vector<4x512xf32>
    %98 = vector.shape_cast %61 : vector<1x512xi1> to vector<1x512xi1>
    %99 = vector.broadcast %98 : vector<1x512xi1> to vector<4x512xi1>
    %100 = arith.select %99, %96, %97 : vector<4x512xi1>, vector<4x512xf32>
    %c3 = arith.constant 3 : index
    %c0_40 = arith.constant 0 : index
    %c0_41 = arith.constant 0 : index
    %101 = vector.load %arg4[%c3, %c0_40, %c0_41] : memref<9x8x4xf32, #tpu.memory_space<vmem>>, vector<1x8x4xf32>
    %102 = vector.shape_cast %101 : vector<1x8x4xf32> to vector<8x4xf32>
    %cst_42 = arith.constant dense<0.000000e+00> : vector<8x512xf32>
    %103 = tpu.matmul %102, %100, %cst_42 {dimension_numbers = #tpu.dot_dimension_numbers<[1], [0], [0], [1], [0, 0, 1, 1], [], []>} : vector<8x4xf32>, vector<4x512xf32>, vector<8x512xf32> -> vector<8x512xf32>
    %104 = arith.addf %95, %103 : vector<8x512xf32>
    %c4 = arith.constant 4 : index
    %c0_43 = arith.constant 0 : index
    %c0_44 = arith.constant 0 : index
    %105 = vector.load %arg4[%c4, %c0_43, %c0_44] : memref<9x8x4xf32, #tpu.memory_space<vmem>>, vector<1x8x4xf32>
    %106 = vector.shape_cast %105 : vector<1x8x4xf32> to vector<8x4xf32>
    %cst_45 = arith.constant dense<0.000000e+00> : vector<8x512xf32>
    %107 = tpu.matmul %106, %10, %cst_45 {dimension_numbers = #tpu.dot_dimension_numbers<[1], [0], [0], [1], [0, 0, 1, 1], [], []>} : vector<8x4xf32>, vector<4x512xf32>, vector<8x512xf32> -> vector<8x512xf32>
    %108 = arith.addf %104, %107 : vector<8x512xf32>
    %c511_i32 = arith.constant 511 : i32
    %109 = tpu.dynamic_rotate %10 by %c511_i32 dim 1 : vector<4x512xf32>, i32 -> vector<4x512xf32>
    %cst_46 = arith.constant 0.000000e+00 : f32
    %110 = vector.broadcast %cst_46 : f32 to vector<4x512xf32>
    %111 = vector.shape_cast %63 : vector<1x512xi1> to vector<1x512xi1>
    %112 = vector.broadcast %111 : vector<1x512xi1> to vector<4x512xi1>
    %113 = arith.select %112, %109, %110 : vector<4x512xi1>, vector<4x512xf32>
    %c5 = arith.constant 5 : index
    %c0_47 = arith.constant 0 : index
    %c0_48 = arith.constant 0 : index
    %114 = vector.load %arg4[%c5, %c0_47, %c0_48] : memref<9x8x4xf32, #tpu.memory_space<vmem>>, vector<1x8x4xf32>
    %115 = vector.shape_cast %114 : vector<1x8x4xf32> to vector<8x4xf32>
    %cst_49 = arith.constant dense<0.000000e+00> : vector<8x512xf32>
    %116 = tpu.matmul %115, %113, %cst_49 {dimension_numbers = #tpu.dot_dimension_numbers<[1], [0], [0], [1], [0, 0, 1, 1], [], []>} : vector<8x4xf32>, vector<4x512xf32>, vector<8x512xf32> -> vector<8x512xf32>
    %117 = arith.addf %108, %116 : vector<8x512xf32>
    %c497_i32 = arith.constant 497 : i32
    %118 = tpu.dynamic_rotate %10 by %c497_i32 dim 1 : vector<4x512xf32>, i32 -> vector<4x512xf32>
    %cst_50 = arith.constant 0.000000e+00 : f32
    %119 = vector.broadcast %cst_50 : f32 to vector<4x512xf32>
    %120 = vector.shape_cast %66 : vector<1x512xi1> to vector<1x512xi1>
    %121 = vector.broadcast %120 : vector<1x512xi1> to vector<4x512xi1>
    %122 = arith.select %121, %118, %119 : vector<4x512xi1>, vector<4x512xf32>
    %c6 = arith.constant 6 : index
    %c0_51 = arith.constant 0 : index
    %c0_52 = arith.constant 0 : index
    %123 = vector.load %arg4[%c6, %c0_51, %c0_52] : memref<9x8x4xf32, #tpu.memory_space<vmem>>, vector<1x8x4xf32>
    %124 = vector.shape_cast %123 : vector<1x8x4xf32> to vector<8x4xf32>
    %cst_53 = arith.constant dense<0.000000e+00> : vector<8x512xf32>
    %125 = tpu.matmul %124, %122, %cst_53 {dimension_numbers = #tpu.dot_dimension_numbers<[1], [0], [0], [1], [0, 0, 1, 1], [], []>} : vector<8x4xf32>, vector<4x512xf32>, vector<8x512xf32> -> vector<8x512xf32>
    %126 = arith.addf %117, %125 : vector<8x512xf32>
    %c496_i32 = arith.constant 496 : i32
    %127 = tpu.dynamic_rotate %10 by %c496_i32 dim 1 : vector<4x512xf32>, i32 -> vector<4x512xf32>
    %cst_54 = arith.constant 0.000000e+00 : f32
    %128 = vector.broadcast %cst_54 : f32 to vector<4x512xf32>
    %129 = vector.shape_cast %59 : vector<1x512xi1> to vector<1x512xi1>
    %130 = vector.broadcast %129 : vector<1x512xi1> to vector<4x512xi1>
    %131 = arith.select %130, %127, %128 : vector<4x512xi1>, vector<4x512xf32>
    %c7 = arith.constant 7 : index
    %c0_55 = arith.constant 0 : index
    %c0_56 = arith.constant 0 : index
    %132 = vector.load %arg4[%c7, %c0_55, %c0_56] : memref<9x8x4xf32, #tpu.memory_space<vmem>>, vector<1x8x4xf32>
    %133 = vector.shape_cast %132 : vector<1x8x4xf32> to vector<8x4xf32>
    %cst_57 = arith.constant dense<0.000000e+00> : vector<8x512xf32>
    %134 = tpu.matmul %133, %131, %cst_57 {dimension_numbers = #tpu.dot_dimension_numbers<[1], [0], [0], [1], [0, 0, 1, 1], [], []>} : vector<8x4xf32>, vector<4x512xf32>, vector<8x512xf32> -> vector<8x512xf32>
    %135 = arith.addf %126, %134 : vector<8x512xf32>
    %c495_i32 = arith.constant 495 : i32
    %136 = tpu.dynamic_rotate %10 by %c495_i32 dim 1 : vector<4x512xf32>, i32 -> vector<4x512xf32>
    %cst_58 = arith.constant 0.000000e+00 : f32
    %137 = vector.broadcast %cst_58 : f32 to vector<4x512xf32>
    %138 = vector.shape_cast %67 : vector<1x512xi1> to vector<1x512xi1>
    %139 = vector.broadcast %138 : vector<1x512xi1> to vector<4x512xi1>
    %140 = arith.select %139, %136, %137 : vector<4x512xi1>, vector<4x512xf32>
    %c8 = arith.constant 8 : index
    %c0_59 = arith.constant 0 : index
    %c0_60 = arith.constant 0 : index
    %141 = vector.load %arg4[%c8, %c0_59, %c0_60] : memref<9x8x4xf32, #tpu.memory_space<vmem>>, vector<1x8x4xf32>
    %142 = vector.shape_cast %141 : vector<1x8x4xf32> to vector<8x4xf32>
    %cst_61 = arith.constant dense<0.000000e+00> : vector<8x512xf32>
    %143 = tpu.matmul %142, %140, %cst_61 {dimension_numbers = #tpu.dot_dimension_numbers<[1], [0], [0], [1], [0, 0, 1, 1], [], []>} : vector<8x4xf32>, vector<4x512xf32>, vector<8x512xf32> -> vector<8x512xf32>
    %144 = arith.addf %135, %143 : vector<8x512xf32>
    %c0_62 = arith.constant 0 : index
    %c0_63 = arith.constant 0 : index
    %145 = vector.load %arg5[%c0_62, %c0_63] : memref<8x1xf32, #tpu.memory_space<vmem>>, vector<8x1xf32>
    %146 = vector.broadcast %145 : vector<8x1xf32> to vector<8x512xf32>
    %147 = arith.addf %144, %146 : vector<8x512xf32>
    %cst_64 = arith.constant 0.000000e+00 : f32
    %148 = vector.broadcast %cst_64 : f32 to vector<8x512xf32>
    %149 = arith.cmpf ogt, %147, %148 : vector<8x512xf32>
    %cst_65 = arith.constant 0.00999999977 : f32
    %150 = vector.broadcast %cst_65 : f32 to vector<8x512xf32>
    %151 = arith.mulf %150, %147 : vector<8x512xf32>
    %152 = arith.select %149, %147, %151 : vector<8x512xi1>, vector<8x512xf32>
    %c0_66 = arith.constant 0 : index
    %c0_67 = arith.constant 0 : index
    %153 = vector.load %arg1[%c0_66, %c0_67] : memref<8x512xf32, #tpu.memory_space<vmem>>, vector<8x512xf32>
    %154 = arith.addf %152, %153 : vector<8x512xf32>
    %c0_68 = arith.constant 0 : index
    %c0_69 = arith.constant 0 : index
    %155 = vector.load %arg6[%c0_68, %c0_69] : memref<8x512xf32, #tpu.memory_space<vmem>>, vector<8x512xf32>
    tpu.vector_store %arg6[%c0_68, %c0_69], %154 {strides = array<i32>} : memref<8x512xf32, #tpu.memory_space<vmem>>, vector<8x512xf32>,
    return
  }
  func.func @transform_0(%arg0: i32) -> (i32, i32) {
    %c0_i32 = arith.constant 0 : i32
    %c0_i32_0 = arith.constant 0 : i32
    return %c0_i32, %arg0 : i32, i32
  }
  func.func @transform_1(%arg0: i32) -> (i32, i32) {
    %c0_i32 = arith.constant 0 : i32
    %c0_i32_0 = arith.constant 0 : i32
    %c0_i32_1 = arith.constant 0 : i32
    return %c0_i32, %c0_i32_0 : i32, i32
  }
  func.func @transform_2(%arg0: i32) -> (i32, i32) {
    %c0_i32 = arith.constant 0 : i32
    %c0_i32_0 = arith.constant 0 : i32
    %c0_i32_1 = arith.constant 0 : i32
    return %c0_i32, %c0_i32_0 : i32, i32
  }
  func.func @transform_3(%arg0: i32) -> (i32, i32, i32) {
    %c0_i32 = arith.constant 0 : i32
    %c0_i32_0 = arith.constant 0 : i32
    %c0_i32_1 = arith.constant 0 : i32
    %c0_i32_2 = arith.constant 0 : i32
    return %c0_i32, %c0_i32_0, %c0_i32_1 : i32, i32, i32
  }
  func.func @transform_4(%arg0: i32) -> (i32, i32) {
    %c0_i32 = arith.constant 0 : i32
    %c0_i32_0 = arith.constant 0 : i32
    %c0_i32_1 = arith.constant 0 : i32
    return %c0_i32, %c0_i32_0 : i32, i32
  }
  func.func @transform_5(%arg0: i32) -> (i32, i32) {
    %c0_i32 = arith.constant 0 : i32
    %c0_i32_0 = arith.constant 0 : i32
    return %c0_i32, %arg0 : i32, i32
  }
}

</mosaic_0001>

<bundles_post_ra>
// kernel: tpu_custom_call.1
= control target key start
LH: loop header
LB: loop body
LE: loop exit
PB: predicated region body
PF: predicated region fallthrough
CT: control target
= control target key end

     0   :  { %vm32_vm0 = vcmask 64512   ;;  %v2196_v5 = vmov 0.0   ;;  %s2672_s0 = inlined_call_operand.vmem [shape: f32[8,512], index: 0, kind: input, shape index: {}]   ;;  %s2673_s1 = inlined_call_operand.vmem [shape: f32[4,8], index: 1, kind: input, shape index: {}]   ;;  %s2674_s2 = inlined_call_operand.vmem [shape: f32[4,1], index: 2, kind: input, shape index: {}]   ;;  %s2675_s3 = inlined_call_operand.vmem [shape: f32[9,8,4], index: 3, kind: input, shape index: {}]   ;;  %s2676_s4 = inlined_call_operand.vmem [shape: f32[8,1], index: 4, kind: input, shape index: {}]   ;;  %s2677_s5 = inlined_call_operand.hbm [shape: f32[8,512], index: 5, kind: output, shape index: {}]  }
   0x1   :  { %v2240_v0 = vld [vmem:[%s2672_s0 + $0x8] sm:$0xff]  ;;  %v2245_v1 = vld [vmem:[%s2672_s0 + $0x18] sm:$0xff]  ;;  %v2250_v2 = vld [vmem:[%s2672_s0] sm:$0xff]  ;;  %100 = vmatprep.mubr.f32.mxu0 %v2196_v5 }
   0x2   :  { %36 = vmatprep.subr.mxu0 %v2240_v0  ;;  %107 = vmatprep.subr.mxu1 %v2245_v1  ;;  %v2257_v3 = vld [vmem:[%s2672_s0 + $0x10] sm:$0xff]  ;;  %v21_v4 = vld [vmem:[%s2673_s1] sm:$0xf] }
   0x3   :  { %37 = vmatpush1.msra.mxu0 %v2250_v2 }
   0x4   :  { %10 = vsyncpa [#allocation3], 0  ;;  %108 = vmatpush1.msra.mxu1 %v2257_v3  ;;  %171 = vmatprep.mubr.f32.mxu1 %v2196_v5  ;;  %v26_v6 = vld [vmem:[%s2674_s2] sm:$0xf]  ;;  %v2197_v7 = vmov 0   ;;  %s2198_s0 = smov 16   ;;  %v190_v25 = vlaneseq }
   0x5   :  { %2035 = vmatmul.mubr.msk.f32.vlgmr.msra.gmra.mrb[0].mxu0 %vm32_vm0, %v21_v4  ;;  %2036 = vmatmul.mubr.msk.f32.vlgmr.msra.gmra.mrb[0].mxu1 %vm32_vm0, %v21_v4  ;;  %s2199_s1 = smov 17   ;;  %s2200_s2 = smov 15   ;;  %v1991_v52 = vld [vmem:[%s2676_s4] sm:$0xff] }
   0x6   :  { %2170 = vset.pattern.permute.xlu0 %v2197_v7  ;;  %465 = vmatprep.mubr.f32.mxu0 %v2196_v5  ;;  %s2201_s30 = smov 1   ;;  %s2202_s6 = smov 127   ;;  %v2297_v26 = vand.u32 127, %v190_v25 }
   0x7   :  { %29 = vperm.xlu0 %2170, %v26_v6   ;;  %536 = vmatprep.mubr.f32.mxu1 %v2196_v5  ;;  %s2203_s7 = smov 113   ;;  %s2204_s8 = smov 112  }
   0x8   :  { %2171 = vset.pattern.permute.xlu1 %v2197_v7  ;;  %v192_v27 = vadd.s32 128, %v2297_v26  ;;  %v193_v28 = vadd.s32 256, %v2297_v26  ;;  %v194_v29 = vadd.s32 384, %v2297_v26  ;;  %v195_v32 = vcvt.s32.f32 %v2297_v26  ;;  %s2205_s9 = smov 111   ;;  %s2206_s29 = smov [#allocation2]  }
   0xa   :  { %v196_v30 = vcvt.s32.f32 %v192_v27  ;;  %v197_v31 = vcvt.s32.f32 %v193_v28  ;;  %v198_v33 = vcvt.s32.f32 %v194_v29  ;;  %v199_v36 = vmul.f32 0.00390625, %v195_v32 }
   0xc   :  { %v200_v34 = vmul.f32 0.00390625, %v196_v30  ;;  %v201_v35 = vmul.f32 0.00390625, %v197_v31  ;;  %v202_v37 = vmul.f32 0.00390625, %v198_v33  ;;  %v2143_v40 = vtrunc.f32 %v199_v36 }
   0xe   :  { %v2145_v38 = vtrunc.f32 %v200_v34  ;;  %v2147_v39 = vtrunc.f32 %v201_v35  ;;  %v2149_v41 = vtrunc.f32 %v202_v37  ;;  %v2144_v44 = vcvt.f32.s32 %v2143_v40 }
  0x10   :  { %v2146_v42 = vcvt.f32.s32 %v2145_v38  ;;  %v2148_v43 = vcvt.f32.s32 %v2147_v39  ;;  %v2150_v45 = vcvt.f32.s32 %v2149_v41  ;;  %v207_v48 = vmul.u32 256, %v2144_v44 }
  0x12   :  { %v208_v46 = vmul.u32 256, %v2146_v42  ;;  %v209_v47 = vmul.u32 256, %v2148_v43  ;;  %v211_v53 = vsub.s32 %v2297_v26, %v207_v48 }
  0x13   :  { %v210_v49 = vmul.u32 256, %v2150_v45 }
  0x14   :  { %v212_v50 = vsub.s32 %v192_v27, %v208_v46  ;;  %v213_v51 = vsub.s32 %v193_v28, %v209_v47  ;;  %v219_v57 = vadd.s32 256, %v211_v53  ;;  %vm215_vm7 = vcmp.lt.s32.totalorder %v211_v53, 0 }
  0x15   :  { %v214_v54 = vsub.s32 %v194_v29, %v210_v49 }
  0x16   :  { %v220_v55 = vadd.s32 256, %v212_v50  ;;  %v221_v56 = vadd.s32 256, %v213_v51  ;;  %vm216_vm5 = vcmp.lt.s32.totalorder %v212_v50, 0  ;;  %vm217_vm6 = vcmp.lt.s32.totalorder %v213_v51, 0 }
  0x17   :  { %v222_v58 = vadd.s32 256, %v214_v54  ;;  %vm218_vm8 = vcmp.lt.s32.totalorder %v214_v54, 0  ;;  %v223_v61 = vsel %vm215_vm7, %v219_v57, %v211_v53  ;;  %vm365_vm7 = vcmp.lt.s32.totalorder %v2297_v26, 16 }
  0x18   :  { %v224_v59 = vsel %vm216_vm5, %v220_v55, %v212_v50  ;;  %v225_v60 = vsel %vm217_vm6, %v221_v56, %v213_v51  ;;  %v2037_v6 = vadd.s32 4294967040, %v223_v61  ;;  %vm227_vm11 = vcmp.ge.s32.totalorder %v223_v61, 256 }
  0x19   :  { %v226_v62 = vsel %vm218_vm8, %v222_v58, %v214_v54  ;;  %v2038_v63 = vadd.s32 4294967040, %v224_v59  ;;  %v2039_v4 = vadd.s32 4294967040, %v225_v60  ;;  %vm228_vm9 = vcmp.ge.s32.totalorder %v224_v59, 256 }
  0x1a   :  { %vm229_vm10 = vcmp.ge.s32.totalorder %v225_v60, 256  ;;  %v2040_v7 = vadd.s32 4294967040, %v226_v62  ;;  %vm230_vm12 = vcmp.ge.s32.totalorder %v226_v62, 256  ;;  %vm388_vm8 = vcmask 1043456  }
  0x86   :  { %v30_v8 = vpop.permute.xlu0 %29 }
  0xd8   :  { %v102_v9 = vpop.f32.mrb[0].mxu0  ;;  %v173_v10 = vpop.f32.mrb[0].mxu1 }
  0xd9   :  { %v103_v11 = vadd.f32 %v102_v9, %v30_v8  ;;  %v174_v12 = vadd.f32 %v173_v10, %v30_v8  ;;  %v104_v13 = vpop.f32.mrb[1].mxu0  ;;  %v175_v14 = vpop.f32.mrb[1].mxu1  ;;  %v237_v9 = vsel %vm229_vm10, %v2039_v4, %v225_v60  ;;  %v235_v10 = vsel %vm227_vm11, %v2037_v6, %v223_v61 }
  0xda   :  { %v105_v15 = vadd.f32 %v104_v13, %v30_v8  ;;  %v176_v16 = vadd.f32 %v175_v14, %v30_v8  ;;  %v236_v8 = vsel %vm228_vm9, %v2038_v63, %v224_v59  ;;  %v241_v13 = vcvt.s32.f32 %v237_v9 }
  0xdb   :  { %vm178_vm1 = vcmp.gt.f32.partialorder %v103_v11, 0.0  ;;  %v182_v17 = vmul.f32 0.01, %v103_v11  ;;  %vm180_vm2 = vcmp.gt.f32.partialorder %v174_v12, 0.0  ;;  %v184_v18 = vmul.f32 0.01, %v174_v12 }
  0xdc   :  { %v183_v21 = vmul.f32 0.01, %v105_v15  ;;  %v185_v22 = vmul.f32 0.01, %v176_v16  ;;  %vm179_vm3 = vcmp.gt.f32.partialorder %v105_v15, 0.0  ;;  %vm181_vm4 = vcmp.gt.f32.partialorder %v176_v16, 0.0 }
  0xdd   :  { %v2271_v19 = vsel %vm178_vm1, %v103_v11, %v182_v17  ;;  %v2273_v20 = vsel %vm180_vm2, %v174_v12, %v184_v18  ;;  %v238_v11 = vsel %vm230_vm12, %v2040_v7, %v226_v62  ;;  %v240_v12 = vcvt.s32.f32 %v236_v8 }
  0xde   :  { %361 = vrot.lane.b32.xlu1 %v2273_v20, %s2198_s0  ;;  %357 = vrot.lane.b32.xlu0 %v2271_v19, %s2198_s0  ;;  %v2277_v23 = vsel %vm179_vm3, %v105_v15, %v183_v21  ;;  %v2279_v24 = vsel %vm181_vm4, %v176_v16, %v185_v22  ;;  %v239_v14 = vcvt.s32.f32 %v235_v10  ;;  %v242_v15 = vcvt.s32.f32 %v238_v11 }
  0xdf   :  { %v244_v16 = vmul.f32 0.0625, %v240_v12  ;;  %v245_v17 = vmul.f32 0.0625, %v241_v13  ;;  %vm339_vm11 = vcmp.lt.s32.totalorder %v2297_v26, 17  ;;  %vm384_vm12 = vcmask 31744  }
  0xe0   :  { %v243_v18 = vmul.f32 0.0625, %v239_v14  ;;  %v246_v21 = vmul.f32 0.0625, %v242_v15 }
  0xe1   :  { %v2153_v22 = vtrunc.f32 %v244_v16  ;;  %v2155_v25 = vtrunc.f32 %v245_v17 }
  0xe2   :  { %359 = vrot.lane.b32.xlu1 %v2277_v23, %s2198_s0  ;;  %363 = vrot.lane.b32.xlu0 %v2279_v24, %s2198_s0  ;;  %v2151_v27 = vtrunc.f32 %v243_v18  ;;  %v2157_v28 = vtrunc.f32 %v246_v21  ;;  %s2027_s0 = sshll.u32 %s2206_s29, 4  ;;  %s2028_s0 = int_to_ptr.vmem [resolvable:$true] %s2027_s0 }
  0xe3   :  { %v2154_v29 = vcvt.f32.s32 %v2153_v22  ;;  %v2156_v30 = vcvt.f32.s32 %v2155_v25  ;;  %p2177_p1 = scmp.lt.s32.totalorder %s2028_s0, %s2028_s0 }
  0xe4   :  { %v2152_v31 = vcvt.f32.s32 %v2151_v27  ;;  %v2158_v32 = vcvt.f32.s32 %v2157_v28 }
  0xe5   :  { %v252_v33 = vmul.u32 16, %v2154_v29  ;;  %v253_v34 = vmul.u32 16, %v2156_v30  ;;  %v2042_v41 = vadd.s32 4294967295, %v2154_v29  ;;  %v2043_v42 = vadd.s32 4294967295, %v2156_v30 }
  0xe6   :  { %331 = vrot.lane.b32.xlu1 %v2271_v19, %s2199_s1  ;;  %333 = vrot.lane.b32.xlu0 %v2277_v23, %s2199_s1  ;;  %v251_v35 = vmul.u32 16, %v2152_v31  ;;  %v254_v36 = vmul.u32 16, %v2158_v32  ;;  %v2041_v45 = vadd.s32 4294967295, %v2152_v31  ;;  %v2044_v46 = vadd.s32 4294967295, %v2158_v32 }
  0xe7   :  { %v256_v37 = vsub.s32 %v236_v8, %v252_v33  ;;  %v257_v38 = vsub.s32 %v237_v9, %v253_v34 }
  0xe8   :  { %v255_v39 = vsub.s32 %v235_v10, %v251_v35  ;;  %v258_v40 = vsub.s32 %v238_v11, %v254_v36 }
  0xe9   :  { %vm260_vm13 = vcmp.lt.s32.totalorder %v256_v37, 0  ;;  %vm261_vm14 = vcmp.lt.s32.totalorder %v257_v38, 0  ;;  %v272_v43 = vadd.s32 16, %v256_v37  ;;  %v273_v44 = vadd.s32 16, %v257_v38 }
  0xea   :  { %335 = vrot.lane.b32.xlu1 %v2273_v20, %s2199_s1  ;;  %337 = vrot.lane.b32.xlu0 %v2279_v24, %s2199_s1  ;;  %vm259_vm15 = vcmp.lt.s32.totalorder %v255_v39, 0  ;;  %vm262_vm0 = vcmp.lt.s32.totalorder %v258_v40, 0  ;;  %v271_v47 = vadd.s32 16, %v255_v39  ;;  %v274_v48 = vadd.s32 16, %v258_v40 }
  0xeb   :  { %v268_v49 = vsel %vm260_vm13, %v2042_v41, %v2154_v29  ;;  %v269_v50 = vsel %vm261_vm14, %v2043_v42, %v2156_v30  ;;  %v276_v51 = vsel %vm260_vm13, %v272_v43, %v256_v37  ;;  %v267_v53 = vsel %vm259_vm15, %v2041_v45, %v2152_v31  ;;  %v2049_v31 = vld [vmem:[%s2675_s3 + $0x8] sm:$0xff] }
  0xec   :  { %v270_v54 = vsel %vm262_vm0, %v2044_v46, %v2158_v32  ;;  %v275_v55 = vsel %vm259_vm15, %v271_v47, %v255_v39  ;;  %v278_v56 = vsel %vm262_vm0, %v274_v48, %v258_v40  ;;  %v284_v57 = vadd.s32 1, %v268_v49  ;;  %v356_v47 = vld [vmem:[%s2675_s3] sm:$0xff] }
  0xed   :  { %v285_v58 = vadd.s32 1, %v269_v50  ;;  %vm280_vm1 = vcmp.ge.s32.totalorder %v276_v51, 16  ;;  %v283_v59 = vadd.s32 1, %v267_v53  ;;  %v286_v60 = vadd.s32 1, %v270_v54 }
  0xee   :  { %700 = vrot.lane.b32.xlu1 %v2271_v19, %s2200_s2  ;;  %702 = vrot.lane.b32.xlu0 %v2277_v23, %s2200_s2  ;;  %vm279_vm3 = vcmp.ge.s32.totalorder %v275_v55, 16  ;;  %vm282_vm4 = vcmp.ge.s32.totalorder %v278_v56, 16  ;;  %v2046_v61 = vadd.s32 4294967280, %v276_v51  ;;  %v2322_v63 = vsel %vm280_vm1, %v284_v57, %v268_v49 }
  0xef   :  { %v2328_v8 = vsel %vm279_vm3, %v283_v59, %v267_v53  ;;  %v2331_v9 = vsel %vm282_vm4, %v286_v60, %v270_v54  ;;  %v2045_v10 = vadd.s32 4294967280, %v275_v55  ;;  %v2048_v11 = vadd.s32 4294967280, %v278_v56 }
  0xf0   :  { %v2334_v12 = vsel %vm280_vm1, %v2046_v61, %v276_v51  ;;  %vm300_vm5 = vcmp.gt.s32.totalorder %v2322_v63, 0  ;;  %vm299_vm9 = vcmp.gt.s32.totalorder %v2328_v8, 0  ;;  %vm302_vm10 = vcmp.gt.s32.totalorder %v2331_v9, 0 }
  0xf1   :  { %vm308_vm13 = vcmp.gt.s32.totalorder %v2334_v12, 0  ;;  %v2348_v16 = vsel %vm279_vm3, %v2045_v10, %v275_v55  ;;  %v2351_v17 = vsel %vm282_vm4, %v2048_v11, %v278_v56 }
  0xf2   :  { %704 = vrot.lane.b32.xlu1 %v2273_v20, %s2200_s2  ;;  %706 = vrot.lane.b32.xlu0 %v2279_v24, %s2200_s2  ;;  %vm2370_vm15 = vmand %vm300_vm5, %vm308_vm13  ;;  %vm307_vm0 = vcmp.gt.s32.totalorder %v2348_v16, 0  ;;  %vm2678_vm1 = vcmp.gt.s32.totalorder %v2351_v17, 0 }
  0xf3   :  { %vm2396_vm3 = vmand %vm299_vm9, %vm307_vm0 }
  0xf4   :  { %vm318_vm4 = vmand %vm302_vm10, %vm2678_vm1 }
  0xf6   :  { %888 = vrot.lane.b32.xlu1 %v2271_v19, %s2201_s30  ;;  %890 = vrot.lane.b32.xlu0 %v2277_v23, %s2201_s30 }
  0xfa   :  { %892 = vrot.lane.b32.xlu1 %v2273_v20, %s2201_s30  ;;  %894 = vrot.lane.b32.xlu0 %v2279_v24, %s2201_s30 }
  0xfe   :  { %1239 = vrot.lane.b32.xlu1 %v2271_v19, %s2202_s6  ;;  %1241 = vrot.lane.b32.xlu0 %v2277_v23, %s2202_s6 }
 0x102   :  { %1243 = vrot.lane.b32.xlu1 %v2273_v20, %s2202_s6  ;;  %1245 = vrot.lane.b32.xlu0 %v2279_v24, %s2202_s6 }
 0x106   :  { %1427 = vrot.lane.b32.xlu1 %v2271_v19, %s2203_s7  ;;  %1429 = vrot.lane.b32.xlu0 %v2277_v23, %s2203_s7 }
 0x10a   :  { %1431 = vrot.lane.b32.xlu1 %v2273_v20, %s2203_s7  ;;  %1433 = vrot.lane.b32.xlu0 %v2279_v24, %s2203_s7 }
 0x10e   :  { %1615 = vrot.lane.b32.xlu1 %v2271_v19, %s2204_s8  ;;  %1617 = vrot.lane.b32.xlu0 %v2277_v23, %s2204_s8 }
 0x112   :  { %1619 = vrot.lane.b32.xlu1 %v2273_v20, %s2204_s8  ;;  %1621 = vrot.lane.b32.xlu0 %v2279_v24, %s2204_s8 }
 0x116   :  { %1803 = vrot.lane.b32.xlu1 %v2271_v19, %s2205_s9  ;;  %1805 = vrot.lane.b32.xlu0 %v2277_v23, %s2205_s9 }
 0x11a   :  { %1807 = vrot.lane.b32.xlu1 %v2273_v20, %s2205_s9  ;;  %1809 = vrot.lane.b32.xlu0 %v2279_v24, %s2205_s9 }
 0x11e   :  { %1994 = vperm.xlu1 %2171, %v1991_v52   ;;  %v277_v52 = vsel %vm261_vm14, %v273_v44, %v257_v38 }
 0x11f   :  { %vm281_vm2 = vcmp.ge.s32.totalorder %v277_v52, 16  ;;  %v2047_v62 = vadd.s32 4294967280, %v277_v52 }
 0x120   :  { %v2325_v4 = vsel %vm281_vm2, %v285_v58, %v269_v50 }
 0x121   :  { %v2337_v13 = vsel %vm281_vm2, %v2047_v62, %v277_v52  ;;  %vm301_vm6 = vcmp.gt.s32.totalorder %v2325_v4, 0  ;;  %v2062_v62 = vld [vmem:[%s2675_s3 + $0x10] sm:$0xff] }
 0x122   :  { %vm309_vm14 = vcmp.gt.s32.totalorder %v2337_v13, 0  ;;  %vm2679_vm1 = vcmp.lt.s32.totalorder %v2337_v13, 15 }
 0x123   :  { %vm2386_vm2 = vmand %vm301_vm6, %vm309_vm14 }
 0x150   :  { %v362_v6 = vpop.permute.xlu1 %361  ;;  %v358_v7 = vpop.permute.xlu0 %357 }
 0x154   :  { %v360_v14 = vpop.permute.xlu1 %359  ;;  %v364_v15 = vpop.permute.xlu0 %363 }
 0x155   :  { %v367_v18 = vsel %vm365_vm7, %v360_v14, %v362_v6  ;;  %v368_v21 = vsel %vm365_vm7, %v358_v7, %v360_v14  ;;  %v366_v22 = vsel %vm365_vm7, %v362_v6, %v364_v15  ;;  %v369_v25 = vsel %vm365_vm7, %v364_v15, %v358_v7 }
 0x156   :  { %v379_v27 = vsel %vm300_vm5, %v368_v21, 0.0  ;;  %v380_v28 = vsel %vm301_vm6, %v367_v18, 0.0  ;;  %v378_v29 = vsel %vm299_vm9, %v369_v25, 0.0  ;;  %v381_v30 = vsel %vm302_vm10, %v366_v22, 0.0 }
 0x157   :  { %2050 = vmatprep.subr.msk.mxu0 %vm388_vm8, %v379_v27  ;;  %2053 = vmatprep.subr.msk.mxu1 %vm388_vm8, %v381_v30  ;;  %vm312_vm7 = vcmp.lt.s32.totalorder %v2334_v12, 15 }
 0x158   :  { %v332_v33 = vpop.permute.xlu1 %331  ;;  %2051 = vmatpush1.msk.msra.mxu0 %vm388_vm8, %v378_v29  ;;  %2054 = vmatpush1.msk.msra.mxu1 %vm388_vm8, %v380_v28  ;;  %v334_v34 = vpop.permute.xlu0 %333  ;;  %v2069_v29 = vld [vmem:[%s2675_s3 + $0x18] sm:$0xff] }
 0x159   :  { %v342_v35 = vsel %vm339_vm11, %v332_v33, %v334_v34  ;;  %2052 = vmatmul.mubr.msk.f32.vlgmr.msra.gmra.mrb[2].mxu0 %vm384_vm12, %v2049_v31  ;;  %2055 = vmatmul.mubr.msk.f32.vlgmr.msra.gmra.mrb[2].mxu1 %vm384_vm12, %v2049_v31 }
 0x15a   :  { %v353_v37 = vsel %vm2370_vm15, %v342_v35, 0.0  ;;  %622 = vmatprep.mubr.f32.mxu0 %v2196_v5  ;;  %693 = vmatprep.mubr.f32.mxu1 %v2196_v5  ;;  %vm708_vm15 = vcmp.lt.s32.totalorder %v2297_v26, 15 }
 0x15b   :  { %2056 = vmatprep.subr.msk.mxu0 %vm388_vm8, %v353_v37 }
 0x15c   :  { %v336_v39 = vpop.permute.xlu1 %335  ;;  %v338_v40 = vpop.permute.xlu0 %337 }
 0x15d   :  { %v341_v41 = vsel %vm339_vm11, %v334_v34, %v336_v39  ;;  %v340_v42 = vsel %vm339_vm11, %v336_v39, %v338_v40  ;;  %v343_v43 = vsel %vm339_vm11, %v338_v40, %v332_v33  ;;  %vm320_vm11 = vmand %vm300_vm5, %vm312_vm7 }
 0x15e   :  { %v354_v44 = vsel %vm2386_vm2, %v341_v41, 0.0  ;;  %v352_v45 = vsel %vm2396_vm3, %v343_v43, 0.0  ;;  %v355_v46 = vsel %vm318_vm4, %v340_v42, 0.0  ;;  %vm311_vm2 = vcmp.lt.s32.totalorder %v2348_v16, 15  ;;  %vm2440_vm5 = vmand %vm301_vm6, %vm2679_vm1 }
 0x15f   :  { %2057 = vmatpush1.msk.msra.mxu0 %vm388_vm8, %v352_v45  ;;  %2059 = vmatprep.subr.msk.mxu1 %vm388_vm8, %v355_v46  ;;  %vm314_vm3 = vcmp.lt.s32.totalorder %v2351_v17, 15  ;;  %vm2448_vm4 = vmand %vm299_vm9, %vm311_vm2  ;;  %vm896_vm9 = vcmp.lt.s32.totalorder %v2297_v26, 1 }
 0x160   :  { %v701_v48 = vpop.permute.xlu1 %700  ;;  %2060 = vmatpush1.msk.msra.mxu1 %vm388_vm8, %v354_v44  ;;  %v703_v49 = vpop.permute.xlu0 %702  ;;  %vm322_vm6 = vmand %vm302_vm10, %vm314_vm3  ;;  %vm2690_vm10 = vcmp.gt.s32.totalorder %v2351_v17, 0 }
 0x161   :  { %v711_v50 = vsel %vm708_vm15, %v701_v48, %v703_v49  ;;  %2058 = vmatmul.mubr.msk.f32.vlgmr.msra.gmra.mrb[2].mxu0 %vm384_vm12, %v356_v47  ;;  %2061 = vmatmul.mubr.msk.f32.vlgmr.msra.gmra.mrb[2].mxu1 %vm384_vm12, %v356_v47 }
 0x162   :  { %v722_v52 = vsel %vm320_vm11, %v711_v50, 0.0  ;;  %806 = vmatprep.mubr.f32.mxu0 %v2196_v5  ;;  %877 = vmatprep.mubr.f32.mxu1 %v2196_v5  ;;  %vm304_vm11 = vcmp.lt.s32.totalorder %v2322_v63, 15 }
 0x163   :  { %2063 = vmatprep.subr.msk.mxu0 %vm388_vm8, %v722_v52  ;;  %v2083_v52 = vld [vmem:[%s2675_s3 + $0x28] sm:$0xff] }
 0x164   :  { %v705_v54 = vpop.permute.xlu1 %704  ;;  %v707_v55 = vpop.permute.xlu0 %706 }
 0x165   :  { %v710_v56 = vsel %vm708_vm15, %v703_v49, %v705_v54  ;;  %v709_v57 = vsel %vm708_vm15, %v705_v54, %v707_v55  ;;  %v712_v58 = vsel %vm708_vm15, %v707_v55, %v701_v48  ;;  %vm1247_vm15 = vcmp.lt.s32.totalorder %v2297_v26, 127 }
 0x166   :  { %v723_v59 = vsel %vm2440_vm5, %v710_v56, 0.0  ;;  %v721_v60 = vsel %vm2448_vm4, %v712_v58, 0.0  ;;  %v724_v61 = vsel %vm322_vm6, %v709_v57, 0.0  ;;  %vm306_vm5 = vcmp.lt.s32.totalorder %v2331_v9, 15  ;;  %vm2540_vm6 = vmand %vm304_vm11, %vm308_vm13 }
 0x167   :  { %2064 = vmatpush1.msk.msra.mxu0 %vm388_vm8, %v721_v60  ;;  %2066 = vmatprep.subr.msk.mxu1 %vm388_vm8, %v724_v61  ;;  %vm303_vm4 = vcmp.lt.s32.totalorder %v2328_v8, 15  ;;  %v2097_v8 = vld [vmem:[%s2675_s3 + $0x38] sm:$0xff] }
 0x168   :  { %v889_v6 = vpop.permute.xlu1 %888  ;;  %2067 = vmatpush1.msk.msra.mxu1 %vm388_vm8, %v723_v59  ;;  %v891_v7 = vpop.permute.xlu0 %890 }
 0x169   :  { %v899_v10 = vsel %vm896_vm9, %v889_v6, %v891_v7  ;;  %2065 = vmatmul.mubr.msk.f32.vlgmr.msra.gmra.mrb[2].mxu0 %vm384_vm12, %v2062_v62  ;;  %2068 = vmatmul.mubr.msk.f32.vlgmr.msra.gmra.mrb[2].mxu1 %vm384_vm12, %v2062_v62 }
 0x16a   :  { %v910_v11 = vsel %vm308_vm13, %v899_v10, 0.0  ;;  %994 = vmatprep.mubr.f32.mxu0 %v2196_v5  ;;  %1065 = vmatprep.mubr.f32.mxu1 %v2196_v5  ;;  %vm2560_vm13 = vmand %vm303_vm4, %vm307_vm0  ;;  %v2090_v10 = vld [vmem:[%s2675_s3 + $0x30] sm:$0xff] }
 0x16b   :  { %2070 = vmatprep.subr.msk.mxu0 %vm388_vm8, %v910_v11 }
 0x16c   :  { %v893_v14 = vpop.permute.xlu1 %892  ;;  %v895_v15 = vpop.permute.xlu0 %894 }
 0x16d   :  { %v898_v18 = vsel %vm896_vm9, %v891_v7, %v893_v14  ;;  %v897_v21 = vsel %vm896_vm9, %v893_v14, %v895_v15  ;;  %v900_v22 = vsel %vm896_vm9, %v895_v15, %v889_v6  ;;  %vm1435_vm9 = vcmp.lt.s32.totalorder %v2297_v26, 113 }
 0x16e   :  { %v911_v25 = vsel %vm309_vm14, %v898_v18, 0.0  ;;  %v909_v27 = vsel %vm307_vm0, %v900_v22, 0.0  ;;  %v912_v28 = vsel %vm2690_vm10, %v897_v21, 0.0  ;;  %vm305_vm10 = vcmp.lt.s32.totalorder %v2325_v4, 15  ;;  %vm2607_vm0 = vmand %vm304_vm11, %vm312_vm7  ;;  %v2104_v4 = vld [vmem:[%s2675_s3 + $0x40] sm:$0xff] }
 0x16f   :  { %2071 = vmatpush1.msk.msra.mxu0 %vm388_vm8, %v909_v27  ;;  %2073 = vmatprep.subr.msk.mxu1 %vm388_vm8, %v912_v28 }
 0x170   :  { %v1240_v30 = vpop.permute.xlu1 %1239  ;;  %2074 = vmatpush1.msk.msra.mxu1 %vm388_vm8, %v911_v25  ;;  %2077 = vmatprep.subr.msk.mxu0 %vm388_vm8, %v2277_v23  ;;  %v1242_v31 = vpop.permute.xlu0 %1241 }
 0x171   :  { %2072 = vmatmul.mubr.msk.f32.vlgmr.msra.gmra.mrb[2].mxu0 %vm384_vm12, %v2069_v29  ;;  %2075 = vmatmul.mubr.msk.f32.vlgmr.msra.gmra.mrb[2].mxu1 %vm384_vm12, %v2069_v29  ;;  %v1250_v35 = vsel %vm1247_vm15, %v1240_v30, %v1242_v31 }
 0x172   :  { %2078 = vmatpush1.msk.msra.mxu0 %vm388_vm8, %v2271_v19  ;;  %2080 = vmatprep.subr.msk.mxu1 %vm388_vm8, %v2279_v24  ;;  %v1260_v39 = vsel %vm311_vm2, %v1250_v35, 0.0 }
 0x173   :  { %2081 = vmatpush1.msk.msra.mxu1 %vm388_vm8, %v2273_v20  ;;  %1157 = vmatprep.mubr.f32.mxu0 %v2196_v5  ;;  %v2076_v20 = vld [vmem:[%s2675_s3 + $0x20] sm:$0xff]  ;;  %s2172_s3 = scalar_lea.vmem %s2028_s0, 512 }
 0x174   :  { %v1244_v32 = vpop.permute.xlu1 %1243  ;;  %v1246_v23 = vpop.permute.xlu0 %1245  ;;  %1228 = vmatprep.mubr.f32.mxu1 %v2196_v5  ;;  %p2173_p0 = scmp.ne.s32.totalorder %s2028_s0, %s2172_s3  ;;  %p2178_p2 = scmp.lt.s32.totalorder %s2172_s3, %s2172_s3 }
 0x175   :  { %v1249_v33 = vsel %vm1247_vm15, %v1242_v31, %v1244_v32  ;;  %v1251_v34 = vsel %vm1247_vm15, %v1246_v23, %v1240_v30  ;;  %v1248_v36 = vsel %vm1247_vm15, %v1244_v32, %v1246_v23  ;;  %vm2693_vm15 = vcmp.gt.s32.totalorder %v2351_v17, 0 }
 0x176   :  { %v1261_v19 = vsel %vm312_vm7, %v1249_v33, 0.0  ;;  %v1263_v24 = vsel %vm314_vm3, %v1251_v34, 0.0  ;;  %v1262_v40 = vsel %vm2679_vm1, %v1248_v36, 0.0  ;;  %vm2550_vm1 = vmand %vm306_vm5, %vm2693_vm15  ;;  %p2179_p3 = por %p2178_p2, %p2177_p1 }
 0x177   :  { %2084 = vmatprep.subr.msk.mxu0 %vm388_vm8, %v1261_v19  ;;  %2087 = vmatprep.subr.msk.mxu1 %vm388_vm8, %v1263_v24  ;;  %vm325_vm15 = vmand %vm305_vm10, %vm309_vm14  ;;  %vm1623_vm14 = vcmp.lt.s32.totalorder %v2297_v26, 112 }
 0x178   :  { %v1428_v37 = vpop.permute.xlu1 %1427  ;;  %v1430_v38 = vpop.permute.xlu0 %1429  ;;  %vm2626_vm7 = vmand %vm303_vm4, %vm311_vm2  ;;  %p2180_p4 = pnand %p2179_p3, %p2173_p0 }
 0x179   :  { %2079 = vmatmul.mubr.msk.f32.vlgmr.msra.gmra.mrb[2].mxu0 %vm384_vm12, %v2076_v20  ;;  %2082 = vmatmul.mubr.msk.f32.vlgmr.msra.gmra.mrb[2].mxu1 %vm384_vm12, %v2076_v20  ;;  %v1438_v48 = vsel %vm1435_vm9, %v1428_v37, %v1430_v38 }
 0x17a   :  { %2085 = vmatpush1.msk.msra.mxu0 %vm388_vm8, %v1260_v39  ;;  %2088 = vmatpush1.msk.msra.mxu1 %vm388_vm8, %v1262_v40  ;;  %v1448_v55 = vsel %vm2560_vm13, %v1438_v48, 0.0 }
 0x17b   :  { %1345 = vmatprep.mubr.f32.mxu0 %v2196_v5  ;;  %1416 = vmatprep.mubr.f32.mxu1 %v2196_v5 }
 0x17c   :  { %v1432_v43 = vpop.permute.xlu1 %1431  ;;  %v1434_v44 = vpop.permute.xlu0 %1433 }
 0x17d   :  { %v1437_v46 = vsel %vm1435_vm9, %v1430_v38, %v1432_v43  ;;  %v1439_v47 = vsel %vm1435_vm9, %v1434_v44, %v1428_v37  ;;  %v1436_v50 = vsel %vm1435_vm9, %v1432_v43, %v1434_v44 }
 0x17e   :  { %v1449_v49 = vsel %vm2540_vm6, %v1437_v46, 0.0  ;;  %v1451_v51 = vsel %vm2550_vm1, %v1439_v47, 0.0  ;;  %v1450_v56 = vsel %vm325_vm15, %v1436_v50, 0.0  ;;  %vm1811_vm1 = vcmp.lt.s32.totalorder %v2297_v26, 111  ;;  %vm2616_vm6 = vmand %vm306_vm5, %vm314_vm3 }
 0x17f   :  { %2091 = vmatprep.subr.msk.mxu0 %vm388_vm8, %v1449_v49  ;;  %2094 = vmatprep.subr.msk.mxu1 %vm388_vm8, %v1451_v51  ;;  %vm2704_vm3 = vcmp.lt.s32.totalorder %v2337_v13, 15 }
 0x180   :  { %v1616_v53 = vpop.permute.xlu1 %1615  ;;  %v1618_v54 = vpop.permute.xlu0 %1617 }
 0x181   :  { %2086 = vmatmul.mubr.msk.f32.vlgmr.msra.gmra.mrb[2].mxu0 %vm384_vm12, %v2083_v52  ;;  %2089 = vmatmul.mubr.msk.f32.vlgmr.msra.gmra.mrb[2].mxu1 %vm384_vm12, %v2083_v52  ;;  %v1626_v61 = vsel %vm1623_vm14, %v1616_v53, %v1618_v54 }
 0x182   :  { %2092 = vmatpush1.msk.msra.mxu0 %vm388_vm8, %v1448_v55  ;;  %2095 = vmatpush1.msk.msra.mxu1 %vm388_vm8, %v1450_v56  ;;  %v1636_v15 = vsel %vm303_vm4, %v1626_v61, 0.0 }
 0x183   :  { %1533 = vmatprep.mubr.f32.mxu0 %v2196_v5  ;;  %1604 = vmatprep.mubr.f32.mxu1 %v2196_v5 }
 0x184   :  { %v1620_v57 = vpop.permute.xlu1 %1619  ;;  %v1622_v58 = vpop.permute.xlu0 %1621 }
 0x185   :  { %v1625_v59 = vsel %vm1623_vm14, %v1618_v54, %v1620_v57  ;;  %v1627_v60 = vsel %vm1623_vm14, %v1622_v58, %v1616_v53  ;;  %v1624_v6 = vsel %vm1623_vm14, %v1620_v57, %v1622_v58 }
 0x186   :  { %v1637_v62 = vsel %vm304_vm11, %v1625_v59, 0.0  ;;  %v1639_v7 = vsel %vm306_vm5, %v1627_v60, 0.0  ;;  %v1638_v18 = vsel %vm305_vm10, %v1624_v6, 0.0  ;;  %vm329_vm11 = vmand %vm305_vm10, %vm2704_vm3 }
 0x187   :  { %2098 = vmatprep.subr.msk.mxu0 %vm388_vm8, %v1637_v62  ;;  %2101 = vmatprep.subr.msk.mxu1 %vm388_vm8, %v1639_v7 }
 0x188   :  { %v1804_v11 = vpop.permute.xlu1 %1803  ;;  %v1806_v14 = vpop.permute.xlu0 %1805 }
 0x189   :  { %2093 = vmatmul.mubr.msk.f32.vlgmr.msra.gmra.mrb[2].mxu0 %vm384_vm12, %v2090_v10  ;;  %2096 = vmatmul.mubr.msk.f32.vlgmr.msra.gmra.mrb[2].mxu1 %vm384_vm12, %v2090_v10  ;;  %v1814_v25 = vsel %vm1811_vm1, %v1804_v11, %v1806_v14 }
 0x18a   :  { %2099 = vmatpush1.msk.msra.mxu0 %vm388_vm8, %v1636_v15  ;;  %2102 = vmatpush1.msk.msra.mxu1 %vm388_vm8, %v1638_v18  ;;  %v1824_v29 = vsel %vm2626_vm7, %v1814_v25, 0.0 }
 0x18b   :  { %1721 = vmatprep.mubr.f32.mxu0 %v2196_v5  ;;  %1792 = vmatprep.mubr.f32.mxu1 %v2196_v5 }
 0x18c   :  { %v1808_v12 = vpop.permute.xlu1 %1807  ;;  %v1810_v63 = vpop.permute.xlu0 %1809 }
 0x18d   :  { %v1813_v17 = vsel %vm1811_vm1, %v1806_v14, %v1808_v12  ;;  %v1815_v9 = vsel %vm1811_vm1, %v1810_v63, %v1804_v11  ;;  %v1812_v28 = vsel %vm1811_vm1, %v1808_v12, %v1810_v63 }
 0x18e   :  { %v1825_v27 = vsel %vm2607_vm0, %v1813_v17, 0.0  ;;  %v1827_v16 = vsel %vm2616_vm6, %v1815_v9, 0.0  ;;  %v1826_v30 = vsel %vm329_vm11, %v1812_v28, 0.0 }
 0x18f   :  { %2105 = vmatprep.subr.msk.mxu0 %vm388_vm8, %v1825_v27  ;;  %2108 = vmatprep.subr.msk.mxu1 %vm388_vm8, %v1827_v16 }
 0x191   :  { %2100 = vmatmul.mubr.msk.f32.vlgmr.msra.gmra.mrb[2].mxu0 %vm384_vm12, %v2097_v8  ;;  %2103 = vmatmul.mubr.msk.f32.vlgmr.msra.gmra.mrb[2].mxu1 %vm384_vm12, %v2097_v8 }
 0x192   :  { %2106 = vmatpush1.msk.msra.mxu0 %vm388_vm8, %v1824_v29  ;;  %2109 = vmatpush1.msk.msra.mxu1 %vm388_vm8, %v1826_v30 }
 0x193   :  { %1909 = vmatprep.mubr.f32.mxu0 %v2196_v5  ;;  %1980 = vmatprep.mubr.f32.mxu1 %v2196_v5 }
 0x199   :  { %2107 = vmatmul.mubr.msk.f32.vlgmr.msra.gmra.mrb[2].mxu0 %vm384_vm12, %v2104_v4  ;;  %2110 = vmatmul.mubr.msk.f32.vlgmr.msra.gmra.mrb[2].mxu1 %vm384_vm12, %v2104_v4 }
 0x19d   :  { %v1995_v13 = vpop.permute.xlu1 %1994 }
 0x26c   :  { %v1911_v31 = vpop.f32.mrb[2].mxu0  ;;  %v1982_v32 = vpop.f32.mrb[2].mxu1 }
 0x26d   :  { %v1997_v23 = vadd.f32 %v1995_v13, %v1911_v31  ;;  %v1999_v33 = vadd.f32 %v1995_v13, %v1982_v32  ;;  %v1913_v34 = vpop.f32.mrb[3].mxu0  ;;  %v1984_v35 = vpop.f32.mrb[3].mxu1 }
 0x26e   :  { %v1998_v19 = vadd.f32 %v1995_v13, %v1913_v34  ;;  %v2000_v36 = vadd.f32 %v1995_v13, %v1984_v35 }
 0x26f   :  { %vm2001_vm8 = vcmp.gt.f32.partialorder %v1997_v23, 0.0  ;;  %v2005_v5 = vmul.f32 0.01, %v1997_v23  ;;  %vm2003_vm2 = vcmp.gt.f32.partialorder %v1999_v33, 0.0  ;;  %v2007_v24 = vmul.f32 0.01, %v1999_v33 }
 0x270   :  { %vm2002_vm5 = vcmp.gt.f32.partialorder %v1998_v19, 0.0  ;;  %v2006_v20 = vmul.f32 0.01, %v1998_v19  ;;  %vm2004_vm4 = vcmp.gt.f32.partialorder %v2000_v36, 0.0  ;;  %v2008_v37 = vmul.f32 0.01, %v2000_v36 }
 0x271   :  { %v2009_v38 = vsel %vm2001_vm8, %v1997_v23, %v2005_v5  ;;  %v2011_v39 = vsel %vm2003_vm2, %v1999_v33, %v2007_v24 }
 0x272   :  { %v2013_v40 = vadd.f32 %v2009_v38, %v2250_v2  ;;  %v2015_v41 = vadd.f32 %v2011_v39, %v2257_v3  ;;  %v2010_v42 = vsel %vm2002_vm5, %v1998_v19, %v2006_v20  ;;  %v2012_v43 = vsel %vm2004_vm4, %v2000_v36, %v2008_v37 }
 0x273   :  { %v2014_v44 = vadd.f32 %v2010_v42, %v2240_v0  ;;  %v2016_v45 = vadd.f32 %v2012_v43, %v2245_v1 }
 0x274   :  { %2017 = vst [vmem:[#allocation2] sm:$0xff] %v2013_v40  ;;  %2019 = vst [vmem:[#allocation2 + $0x10] sm:$0xff] %v2015_v41 }
 0x275   :  { %2018 = vst [vmem:[#allocation2 + $0x8] sm:$0xff] %v2014_v44  ;;  %2020 = vst [vmem:[#allocation2 + $0x18] sm:$0xff] %v2016_v45 }
 0x276   :  { %2183 = shalt.err (!%p2180_p4)
}
 0x277   :  { %s2184_s30 = scalar_lea.hbm %s2677_s5, 512 }
 0x278   :  { %p2185_p5 = scmp.ne.s32.totalorder %s2677_s5, %s2184_s30  ;;  %p2188_p6 = scmp.lt.u32.totalorder %s2184_s30, %s2677_s5 }
 0x27a   :  { %p2190_p7 = pnand %p2188_p6, %p2185_p5 }
 0x27c   :  { %2193 = shalt.err (!%p2190_p7)
}
 0x27d   :  { %2030 = dma.vmem_to_hbm [thread:$0]  %s2028_s0, 512, %s2677_s5, [#allocation3]  }
 0x27e   :  { %2194 = dma.done.wait [#allocation3], 512  }
 0x27f   :  { %2195 = vsyncadd [#allocation3], 4294966784 }
 0x280   :  { %2034 = vsyncpa [#allocation3], 1 }

</bundles_post_ra>
